<compile_context>
chip_gen: v7x
topology: tpu7x:2x2x1
jax: 0.10.0
libtpu: 0.0.40
codegen_flags: <defaults>
</compile_context>

<pallas_src>
import jax
import jax.numpy as jnp
from jax.experimental import pallas as pl
from jax.experimental.pallas import tpu as pltpu


def deep_set_kernel(ids_ref, bd_ref, bw_ref, b2_ref, o_ref):
    """One batch tile of the Deep Set forward.

    ids_ref : (TB*Sg, GROUP) int32 — GROUP consecutive set elements per row,
              already offset into their group's vocab range [g*11, g*11+10].
    bd_ref  : (GROUP*11, GROUP*DH) f32 — block-diagonal kron(I, emb @ w1);
              row 0 of each block is zero (padding_idx=0 preserved).
    bw_ref  : (2, GROUP*DH) f32 — row 0: b1 tiled xGROUP, row 1: w2 tiled xGROUP.
    b2_ref  : (1, 1) f32 in SMEM — encode bias (scalar).
    o_ref   : (1, TB) f32 — lane-dense output (batch on lanes).
    """
    Ng, GROUP = ids_ref.shape
    GV, GDH = bd_ref.shape
    TB = o_ref.shape[1]
    Sg = Ng // TB                                                   # set groups / batch row

    # Grouped one-hot (Ng, GROUP*11): group ranges are disjoint, so the sum of
    # GROUP lane-compares is a clean 0/1 matrix with GROUP ones per row.
    ids = ids_ref[...]                                              # (Ng, GROUP)
    col_iota = jax.lax.broadcasted_iota(jnp.int32, (Ng, GV), 1)     # (Ng, GV)
    one_hot = jnp.zeros((Ng, GV), dtype=jnp.float32)
    for g in range(GROUP):                                          # static unroll
        one_hot = one_hot + (col_iota == ids[:, g:g + 1]).astype(jnp.float32)

    # Single MXU pass: one_hot @ kron(I, emb@w1) -> lane-dense hidden block,
    # then bias + tanh on full 128-lane vregs (VALU / EUP).
    h = jnp.dot(one_hot, bd_ref[...], preferred_element_type=jnp.float32)  # (Ng, GDH)
    h = jnp.tanh(h + bw_ref[0:1, :])                                # (Ng, GDH)

    # Permutation-invariant pooling over the remaining Sg sublane rows per
    # batch element.  Cheap because GDH is lane-aligned (x128) / Sg is tiny;
    # if shapes change so this relayouts, switch to strided pl.ds sublane sums.
    pooled = jnp.sum(h.reshape(TB, Sg, GDH), axis=1)                # (TB, GDH)

    # rho: Linear(d_hidden -> 1) as VPU multiply + lane reduce.  The tiled w2
    # folds the GROUP packing factor into the same reduce (sum over g and d).
    out = jnp.sum(pooled * bw_ref[1:2, :], axis=-1)                 # (TB,)

    o_ref[...] = out.reshape(1, TB) + b2_ref[0, 0]                  # (1, TB), lane-dense


def _round_up(v, m):
    return ((v + m - 1) // m) * m


def digit_func_approximator(x, emb, w1, b1, w2, b2, *, batch_tile=512):
    B, S = x.shape
    V, DE = emb.shape
    DH = w1.shape[1]

    # Lane-packing factor: largest of {4, 2, 1} dividing S with a sane lane
    # width.  GROUP=4, DH=32 -> 128-lane hidden vregs.
    GROUP = 1
    for g in (4, 2):
        if S % g == 0 and g * DH <= 512:
            GROUP = g
            break
    Sg = S // GROUP
    GV, GDH = GROUP * V, GROUP * DH

    # Batch tile: multiple of 128 or B itself (out-block lane divisibility,
    # ids-block sublane divisibility).  For large B ensure >= 2 grid steps so
    # the ("parallel",) axis can shard across v7x's two TensorCores.
    tb_cap = max(128, (batch_tile // 128) * 128)
    if B <= min(tb_cap, 256):
        TB = B                                   # one step; overhead-bound anyway
    else:
        TB = min(tb_cap, max(128, _round_up(pl.cdiv(B, 2), 128)))
    grid = (pl.cdiv(B, TB),)

    # Algebraic fold: one_hot @ emb @ w1 == one_hot @ (emb @ w1).  Padding row
    # 0 of emb is zero, so padding_idx=0 semantics survive the fold.  kron
    # replicates it block-diagonally so GROUP set elements share one matmul.
    fused = jnp.dot(emb, w1, preferred_element_type=jnp.float32)    # (V, DH)
    bd = jnp.kron(jnp.eye(GROUP, dtype=jnp.float32), fused)         # (GV, GDH)

    # Pack dense bias + encode weight into one resident (2, GDH) input.
    bw = jnp.concatenate(
        [jnp.tile(b1.reshape(1, DH).astype(jnp.float32), (1, GROUP)),
         jnp.tile(w2.reshape(1, DH).astype(jnp.float32), (1, GROUP))], axis=0)

    # Pre-flatten + pre-offset the ids on the host/HBM side (free): row r holds
    # GROUP consecutive set elements of one batch row, shifted by g*V.
    ids = (x.astype(jnp.int32).reshape(B * Sg, GROUP)
           + (jnp.arange(GROUP, dtype=jnp.int32) * V)[None, :])

    b2r = b2.reshape(1, 1).astype(jnp.float32)

    out = pl.pallas_call(
        deep_set_kernel,
        out_shape=jax.ShapeDtypeStruct((1, B), jnp.float32),
        grid=grid,
        in_specs=[
            pl.BlockSpec((TB * Sg, GROUP), lambda i: (i, 0)),        # batch-tiled ids
            pl.BlockSpec((GV, GDH), lambda i: (0, 0)),               # resident block-diag weight
            pl.BlockSpec((2, GDH), lambda i: (0, 0)),                # resident b1 / w2 rows
            pl.BlockSpec(memory_space=pltpu.MemorySpace.SMEM),       # b2 scalar in SMEM
        ],
        out_specs=pl.BlockSpec((1, TB), lambda i: (0, i)),           # lane-dense output
        compiler_params=pltpu.CompilerParams(
            dimension_semantics=("parallel",)),                      # v7x: shard batch over 2 TCs
    )(ids, bd, bw, b2r)

    # Restore the module's (B, 1) output shape (layout plumbing in the wrapper).
    return out.reshape(B, 1)


def reference_forward(x, emb, w1, b1, w2, b2):
    e = jnp.take(emb, x, axis=0)                       # (B, S, DE)
    h = jnp.tanh(e @ w1 + b1[None, :, :])              # (B, S, DH)
    pooled = jnp.sum(h, axis=1)                        # (B, DH)
    return pooled @ w2 + b2                            # (B, 1)


if __name__ == "__main__":
    # Small shapes consistent with the module: batch=2, set size=8,
    # d_embed=32, d_hidden=32, activation="Tanh".
    B, S, V, DE, DH = 2, 8, 11, 32, 32

    key = jax.random.PRNGKey(0)
    k_x, k_emb, k_w1, k_b1, k_w2, k_b2 = jax.random.split(key, 6)

    # Deterministic synthetic parameters (not a checkpoint load).
    emb = jax.random.normal(k_emb, (V, DE), dtype=jnp.float32)
    emb = emb.at[0].set(0.0)                           # padding_idx=0 -> zero row
    w1 = jax.random.normal(k_w1, (DE, DH), dtype=jnp.float32) * (1.0 / jnp.sqrt(DE))
    b1 = jax.random.normal(k_b1, (1, DH), dtype=jnp.float32) * 0.01
    w2 = jax.random.normal(k_w2, (DH, 1), dtype=jnp.float32) * (1.0 / jnp.sqrt(DH))
    b2 = jax.random.normal(k_b2, (1, 1), dtype=jnp.float32) * 0.01

    # Integer digit inputs in [0, 10], shape (B, S).
    x = jax.random.randint(k_x, (B, S), 0, V, dtype=jnp.int32)

    out = digit_func_approximator(x, emb, w1, b1, w2, b2)
    out = jax.block_until_ready(out)

    ref = reference_forward(x, emb, w1, b1, w2, b2)
    assert out.shape == (B, 1)
    assert jnp.allclose(out, ref, atol=1e-4, rtol=1e-4), (out, ref)

    # NOTE: padded positions (id == 0) still contribute tanh(b1) to the set
    # sum, exactly as in the PyTorch module (unmasked Embedding(padding_idx=0)
    # followed by a biased Linear).

    print("KERNEL_OK")
</pallas_src>

<mosaic_0001>
module attributes {stable_mosaic.version = 11 : i64} {
  func.func @deep_set_kernel(%arg0: i32, %arg1: memref<4x4xi32, #tpu.memory_space<vmem>>, %arg2: memref<44x128xf32, #tpu.memory_space<vmem>>, %arg3: memref<2x128xf32, #tpu.memory_space<vmem>>, %arg4: memref<1x1xf32, #tpu.memory_space<smem>>, %arg5: memref<1x2xf32, #tpu.memory_space<vmem>>) attributes {dimension_semantics = [#tpu.dimension_semantics<parallel>], iteration_bounds = array<i64: 1>, scalar_prefetch = 0 : i64, scratch_operands = 0 : i64, tpu.core_type = #tpu.core_type<tc>, window_params = [{transform_indices = @transform_0, window_bounds = array<i64: 4, 4>}, {pipeline_mode = #tpu.pipeline_mode<synchronous>, transform_indices = @transform_1, window_bounds = array<i64: 44, 128>}, {pipeline_mode = #tpu.pipeline_mode<synchronous>, transform_indices = @transform_2, window_bounds = array<i64: 2, 128>}, {transform_indices = @transform_3, window_bounds = array<i64: 1, 1>}, {transform_indices = @transform_4, window_bounds = array<i64: 1, 2>}]} {
    %c0 = arith.constant 0 : index
    %c0_0 = arith.constant 0 : index
    %0 = vector.load %arg1[%c0, %c0_0] : memref<4x4xi32, #tpu.memory_space<vmem>>, vector<4x4xi32>
    %1 = tpu.iota {dimensions = array<i32: 1>} : vector<4x44xi32>
    %cst = arith.constant 0.000000e+00 : f32
    %2 = vector.broadcast %cst : f32 to vector<4x44xf32>
    %3 = vector.extract_strided_slice %0 {offsets = [0, 0], sizes = [4, 1], strides = [1, 1]} : vector<4x4xi32> to vector<4x1xi32>
    %4 = vector.broadcast %3 : vector<4x1xi32> to vector<4x44xi32>
    %5 = arith.cmpi eq, %1, %4 : vector<4x44xi32>
    %6 = arith.extui %5 : vector<4x44xi1> to vector<4x44xi32>
    %7 = arith.sitofp %6 : vector<4x44xi32> to vector<4x44xf32>
    %8 = arith.addf %2, %7 : vector<4x44xf32>
    %9 = vector.extract_strided_slice %0 {offsets = [0, 1], sizes = [4, 1], strides = [1, 1]} : vector<4x4xi32> to vector<4x1xi32>
    %10 = vector.broadcast %9 : vector<4x1xi32> to vector<4x44xi32>
    %11 = arith.cmpi eq, %1, %10 : vector<4x44xi32>
    %12 = arith.extui %11 : vector<4x44xi1> to vector<4x44xi32>
    %13 = arith.sitofp %12 : vector<4x44xi32> to vector<4x44xf32>
    %14 = arith.addf %8, %13 : vector<4x44xf32>
    %15 = vector.extract_strided_slice %0 {offsets = [0, 2], sizes = [4, 1], strides = [1, 1]} : vector<4x4xi32> to vector<4x1xi32>
    %16 = vector.broadcast %15 : vector<4x1xi32> to vector<4x44xi32>
    %17 = arith.cmpi eq, %1, %16 : vector<4x44xi32>
    %18 = arith.extui %17 : vector<4x44xi1> to vector<4x44xi32>
    %19 = arith.sitofp %18 : vector<4x44xi32> to vector<4x44xf32>
    %20 = arith.addf %14, %19 : vector<4x44xf32>
    %21 = vector.extract_strided_slice %0 {offsets = [0, 3], sizes = [4, 1], strides = [1, 1]} : vector<4x4xi32> to vector<4x1xi32>
    %22 = vector.broadcast %21 : vector<4x1xi32> to vector<4x44xi32>
    %23 = arith.cmpi eq, %1, %22 : vector<4x44xi32>
    %24 = arith.extui %23 : vector<4x44xi1> to vector<4x44xi32>
    %25 = arith.sitofp %24 : vector<4x44xi32> to vector<4x44xf32>
    %26 = arith.addf %20, %25 : vector<4x44xf32>
    %c0_1 = arith.constant 0 : index
    %c0_2 = arith.constant 0 : index
    %27 = vector.load %arg2[%c0_1, %c0_2] : memref<44x128xf32, #tpu.memory_space<vmem>>, vector<44x128xf32>
    %cst_3 = arith.constant dense<0.000000e+00> : vector<4x128xf32>
    %28 = tpu.matmul %26, %27, %cst_3 {dimension_numbers = #tpu.dot_dimension_numbers<[1], [0], [0], [1], [0, 0, 1, 1], [], []>} : vector<4x44xf32>, vector<44x128xf32>, vector<4x128xf32> -> vector<4x128xf32>
    %c0_4 = arith.constant 0 : index
    %c0_5 = arith.constant 0 : index
    %29 = vector.load %arg3[%c0_4, %c0_5] : memref<2x128xf32, #tpu.memory_space<vmem>>, vector<1x128xf32>
    %30 = vector.broadcast %29 : vector<1x128xf32> to vector<4x128xf32>
    %31 = arith.addf %28, %30 : vector<4x128xf32>
    %32 = math.tanh %31 : vector<4x128xf32>
    %33 = vector.shape_cast %32 : vector<4x128xf32> to vector<2x2x128xf32>
    %cst_6 = arith.constant dense<0.000000e+00> : vector<2x128xf32>
    %34 = vector.multi_reduction <add>, %33, %cst_6 [1] : vector<2x2x128xf32> to vector<2x128xf32>
    %c1 = arith.constant 1 : index
    %c0_7 = arith.constant 0 : index
    %35 = vector.load %arg3[%c1, %c0_7] : memref<2x128xf32, #tpu.memory_space<vmem>>, vector<1x128xf32>
    %36 = vector.broadcast %35 : vector<1x128xf32> to vector<2x128xf32>
    %37 = arith.mulf %34, %36 : vector<2x128xf32>
    %cst_8 = arith.constant dense<0.000000e+00> : vector<2xf32>
    %38 = vector.multi_reduction <add>, %37, %cst_8 [1] : vector<2x128xf32> to vector<2xf32>
    %39 = vector.shape_cast %38 : vector<2xf32> to vector<1x2xf32>
    %c0_9 = arith.constant 0 : index
    %c0_10 = arith.constant 0 : index
    %40 = memref.load %arg4[%c0_9, %c0_10] : memref<1x1xf32, #tpu.memory_space<smem>>
    %41 = vector.broadcast %40 : f32 to vector<1x2xf32>
    %42 = arith.addf %39, %41 : vector<1x2xf32>
    %c0_11 = arith.constant 0 : index
    %c0_12 = arith.constant 0 : index
    %43 = vector.load %arg5[%c0_11, %c0_12] : memref<1x2xf32, #tpu.memory_space<vmem>>, vector<1x2xf32>
    tpu.vector_store %arg5[%c0_11, %c0_12], %42 {strides = array<i32>} : memref<1x2xf32, #tpu.memory_space<vmem>>, vector<1x2xf32>,
    return
  }
  func.func @transform_0(%arg0: i32) -> (i32, i32) {
    %c0_i32 = arith.constant 0 : i32
    %c0_i32_0 = arith.constant 0 : i32
    return %arg0, %c0_i32 : i32, i32
  }
  func.func @transform_1(%arg0: i32) -> (i32, i32) {
    %c0_i32 = arith.constant 0 : i32
    %c0_i32_0 = arith.constant 0 : i32
    %c0_i32_1 = arith.constant 0 : i32
    return %c0_i32, %c0_i32_0 : i32, i32
  }
  func.func @transform_2(%arg0: i32) -> (i32, i32) {
    %c0_i32 = arith.constant 0 : i32
    %c0_i32_0 = arith.constant 0 : i32
    %c0_i32_1 = arith.constant 0 : i32
    return %c0_i32, %c0_i32_0 : i32, i32
  }
  func.func @transform_3(%arg0: i32) -> (i32, i32) {
    %c0_i32 = arith.constant 0 : i32
    %c0_i32_0 = arith.constant 0 : i32
    %c0_i32_1 = arith.constant 0 : i32
    return %c0_i32, %c0_i32_0 : i32, i32
  }
  func.func @transform_4(%arg0: i32) -> (i32, i32) {
    %c0_i32 = arith.constant 0 : i32
    %c0_i32_0 = arith.constant 0 : i32
    return %c0_i32, %arg0 : i32, i32
  }
}

</mosaic_0001>

<bundles_post_ra>
// kernel: tpu_custom_call.1
= control target key start
LH: loop header
LB: loop body
LE: loop exit
PB: predicated region body
PF: predicated region fallthrough
CT: control target
= control target key end

     0   :  { %10 = vsyncpa [#allocation4], 0  ;;  %s462_s0 = inlined_call_operand.hbm [shape: s32[4,4], index: 0, kind: input, shape index: {}]   ;;  %s463_s1 = inlined_call_operand.hbm [shape: f32[44,128], index: 1, kind: input, shape index: {}]   ;;  %s464_s2 = inlined_call_operand.vmem [shape: f32[2,128], index: 2, kind: input, shape index: {}]   ;;  %s465_s3 = inlined_call_operand.<no memory space> [shape: f32[1,1], index: 3, kind: input, shape index: {}]   ;;  %s466_s4 = inlined_call_operand.hbm [shape: f32[1,2], index: 4, kind: output, shape index: {}]  }
   0x1   :  { %11 = vsyncpa [#allocation7], 0 }
   0x2   :  { %12 = vsyncpa [#allocation5], 0  ;;  %s368_s15 = smov [#allocation3]   ;;  %s369_s17 = smov [#allocation6]  }
   0x3   :  { %s19_s16 = sshll.u32 %s368_s15, 4  ;;  %s28_s18 = sshll.u32 %s369_s17, 4  ;;  %s20_s16 = int_to_ptr.vmem [resolvable:$true] %s19_s16  ;;  %s407_s18 = int_to_ptr.vmem [resolvable:$true] %s28_s18 }
   0x4   :  { %s296_s21 = scalar_lea.hbm %s462_s0, 64 }
   0x5   :  { %p297_p0 = scmp.ne.s32.totalorder %s462_s0, %s296_s21  ;;  %p300_p1 = scmp.lt.u32.totalorder %s296_s21, %s462_s0 }
   0x7   :  { %p302_p2 = pnand %p300_p1, %p297_p0 }
   0x9   :  { %305 = shalt.err (!%p302_p2)
}
   0xa   :  { %s306_s26 = scalar_lea.vmem %s20_s16, 64  ;;  %p311_p4 = scmp.lt.s32.totalorder %s20_s16, %s20_s16 }
   0xb   :  { %p307_p3 = scmp.ne.s32.totalorder %s20_s16, %s306_s26  ;;  %p312_p5 = scmp.lt.s32.totalorder %s306_s26, %s306_s26 }
   0xd   :  { %p313_p6 = por %p312_p5, %p311_p4 }
   0xf   :  { %p314_p7 = pnand %p313_p6, %p307_p3 }
  0x11   :  { %317 = shalt.err (!%p314_p7)
}
  0x12   :  { %22 = dma.hbm_to_vmem [thread:$0]  %s462_s0, 64, %s20_s16, [#allocation4]  }
  0x13   :  { %s318_s5 = scalar_lea.hbm %s463_s1, 768 }
  0x14   :  { %p319_p8 = scmp.ne.s32.totalorder %s463_s1, %s318_s5  ;;  %p322_p9 = scmp.lt.u32.totalorder %s318_s5, %s463_s1 }
  0x16   :  { %p324_p10 = pnand %p322_p9, %p319_p8 }
  0x18   :  { %327 = shalt.err (!%p324_p10)
}
  0x19   :  { %s328_s10 = scalar_lea.vmem %s407_s18, 768  ;;  %p333_p12 = scmp.lt.s32.totalorder %s407_s18, %s407_s18 }
  0x1a   :  { %p329_p11 = scmp.ne.s32.totalorder %s407_s18, %s328_s10  ;;  %p334_p13 = scmp.lt.s32.totalorder %s328_s10, %s328_s10 }
  0x1c   :  { %p335_p0 = por %p334_p13, %p333_p12 }
  0x1e   :  { %p336_p1 = pnand %p335_p0, %p329_p11 }
  0x20   :  { %339 = shalt.err (!%p336_p1)
}
  0x21   :  { %s370_s0 = smov 128   ;;  %s371_s11 = smov 8  }
  0x22   :  { %34 = dma.hbm_to_vmem [thread:$0]  %s463_s1, 768, %s407_s18, [#allocation7], %s370_s0, %s370_s0, %s371_s11  }
  0x23   :  { %362 = dma.done.wait [#allocation4], 64  }
  0x24   :  { %363 = vsyncadd [#allocation4], 4294967232 }
  0x25   :  { %364 = dma.done.wait [#allocation7], 768  }
  0x26   :  { %365 = vsyncadd [#allocation7], 4294966528  ;;  %v372_v0 = vmov 0   ;;  %v373_v1 = vmov 2   ;;  %v45_v2 = vld [vmem:[#allocation3] sm:$0xf]  ;;  %v46_v16 = vlaneseq  ;;  %v209_v61 = vstv %s465_s3 }
  0x27   :  { %289 = vset.pattern.permute.xlu0 %v372_v0  ;;  %291 = vset.pattern.permute.xlu1 %v373_v1  ;;  %v76_v3 = vld [vmem:[#allocation6] sm:$0xff]  ;;  %v77_v4 = vld [vmem:[#allocation6 + $0x8] sm:$0xff]  ;;  %v374_v6 = vmov 0.0|0.0   ;;  %v78_v7 = vld [vmem:[#allocation6 + $0x10] sm:$0xff]  ;;  %v375_v9 = vmov 1   ;;  %v376_v10 = vmov 3  }
  0x28   :  { %49 = vperm.xlu0 %289, %v45_v2   ;;  %63 = vperm.xlu1 %291, %v45_v2   ;;  %v266_v5 = vpack.c.bf16 %v77_v4, %v76_v3  ;;  %v79_v8 = vld [vmem:[#allocation6 + $0x18] sm:$0xff]  ;;  %v80_v12 = vld [vmem:[#allocation6 + $0x20] sm:$0xff]  ;;  %v81_v13 = vld [vmem:[#allocation6 + $0x28] sm:$0xf]  ;;  %vm91_vm0 = vcmask 1043456   ;;  %vm377_vm1 = vmmov 1  }
  0x29   :  { %265 = vmatprep.subr.bf16.mxu0 %v374_v6  ;;  %v269_v11 = vpack.c.bf16 %v79_v8, %v78_v7  ;;  %v272_v14 = vpack.c.bf16 %v81_v13, %v80_v12  ;;  %vm273_vm2 = vmpackc.low %vm91_vm0, %vm377_vm1  ;;  %vm378_vm3 = vmmov 0   ;;  %v379_v15 = vmov 0.0   ;;  %v239_v29 = vld [vmem:[%s464_s2] ss:$0 sm:$0xff]  ;;  %v242_v55 = vld [vmem:[%s464_s2 + $0x1] ss:$0 sm:$0xff] }
  0x2a   :  { %267 = vmatpush3.bf16.msra.mxu0 %v266_v5  ;;  %262 = vmatprep.mubr.msk.f32.mxu0 %vm378_vm3, %v379_v15  ;;  %v47_v17 = vand.u32 127, %v46_v16  ;;  %vm87_vm8 = vcmask 359424   ;;  %v380_v33 = vmov 1983009808   ;;  %v171_v36 = vshrl.u32 %v46_v16, 7  ;;  %s381_s19 = smov [#allocation8]  }
  0x2b   :  { %268 = vmatprep.subr.bf16.mxu0 %v374_v6  ;;  %v168_v34 = vunpack.c.l.s4 %v380_v33  ;;  %vm177_vm9 = vcmask 1041408   ;;  %vm202_vm10 = vcmask 1041409   ;;  %s225_s20 = sshll.u32 %s381_s19, 4  ;;  %vm217_vm11 = vcmask 8192   ;;  %s226_s20 = int_to_ptr.vmem [resolvable:$true] %s225_s20 }
  0x2c   :  { %290 = vset.pattern.permute.xlu0 %v375_v9  ;;  %292 = vset.pattern.permute.xlu1 %v376_v10  ;;  %v214_v62 = vsub.s32 %v47_v17, %v171_v36  ;;  %s340_s2 = scalar_lea.vmem %s226_s20, 16  ;;  %s344_s21 = scalar_lea.vmem %s226_s20, 32 }
  0x2d   :  { %56 = vperm.xlu0 %290, %v45_v2   ;;  %70 = vperm.xlu1 %292, %v45_v2   ;;  %v169_v35 = vunpack.c.0.s8 %v168_v34  ;;  %p341_p2 = scmp.ne.s32.totalorder %s226_s20, %s340_s2  ;;  %p345_p3 = scmp.lt.s32.totalorder %s226_s20, %s226_s20 }
  0x2e   :  { %270 = vmatpush3.bf16.msra.mxu0 %v269_v11  ;;  %p346_p4 = scmp.lt.s32.totalorder %s344_s21, %s340_s2 }
  0x2f   :  { %271 = vmatprep.subr.bf16.mxu0 %v374_v6  ;;  %v172_v37 = vsub.s32 %v169_v35, %v171_v36 }
  0x30   :  { %p347_p5 = por %p346_p4, %p345_p3 }
  0x31   :  { %293 = vset.pattern.permute.xlu0 %v376_v10 }
  0x32   :  { %274 = vmatpush3.bf16.msk.msra.mxu0 %vm273_vm2, %v272_v14  ;;  %p348_p6 = pnand %p347_p5, %p341_p2 }
  0xa7   :  { %v50_v18 = vpop.permute.xlu0 %49  ;;  %v64_v19 = vpop.permute.xlu1 %63 }
  0xa8   :  { %vm51_vm4 = vcmp.eq.s32.totalorder %v47_v17, %v50_v18  ;;  %vm65_vm5 = vcmp.eq.s32.totalorder %v47_v17, %v64_v19 }
  0xa9   :  { %v235_v22 = vsel %vm51_vm4, 1.0, %v379_v15  ;;  %v237_v25 = vsel %vm65_vm5, 1.0, %v379_v15 }
  0xac   :  { %v57_v20 = vpop.permute.xlu0 %56  ;;  %v71_v21 = vpop.permute.xlu1 %70 }
  0xad   :  { %vm58_vm6 = vcmp.eq.s32.totalorder %v47_v17, %v57_v20  ;;  %vm72_vm7 = vcmp.eq.s32.totalorder %v47_v17, %v71_v21 }
  0xae   :  { %v236_v23 = vsel %vm58_vm6, 1.0, %v379_v15  ;;  %v238_v26 = vsel %vm72_vm7, 1.0, %v379_v15 }
  0xaf   :  { %v61_v24 = vadd.f32 %v236_v23, %v235_v22 }
  0xb1   :  { %v68_v27 = vadd.f32 %v237_v25, %v61_v24 }
  0xb3   :  { %v75_v28 = vadd.f32 %v238_v26, %v68_v27 }
  0xb5   :  { %263 = vmatmul.mubr.msk.f32.vlgmr.msra.gmra.mrb[0].mxu0 %vm87_vm8, %v75_v28 }
 0x188   :  { %v161_v30 = vpop.f32.mrb[0].mxu0 }
 0x189   :  { %v162_v31 = vadd.f32 %v239_v29, %v161_v30  ;;  %v264_v32 = vpop.f32.mrb[1].mxu0 }
 0x18b   :  { %294 = vtanh.f32 %v162_v31 }
 0x195   :  { %v295_v38 = vpop.eup %294 }
 0x196   :  { %v173_v39 = vrot.slane %v295_v38, %v172_v37 }
 0x198   :  { %v174_v40 = vcombine.high %v173_v39, %v173_v39  ;;  %v178_v41 = vsel %vm177_vm9, %v173_v39, 0.0 }
 0x199   :  { %v179_v42 = vrot.slane %v178_v41, 4 }
 0x19a   :  { %v185_v43 = vsel %vm177_vm9, %v174_v40, 0.0 }
 0x19b   :  { %v180_v44 = vadd.f32 %v179_v42, %v178_v41  ;;  %v186_v45 = vrot.slane %v185_v43, 4 }
 0x19d   :  { %v181_v46 = vrot.slane %v180_v44, 2  ;;  %v187_v47 = vadd.f32 %v186_v45, %v185_v43 }
 0x19f   :  { %v182_v48 = vadd.f32 %v181_v46, %v180_v44  ;;  %v188_v49 = vrot.slane %v187_v47, 2 }
 0x1a1   :  { %v183_v50 = vrot.slane %v182_v48, 1  ;;  %v189_v51 = vadd.f32 %v188_v49, %v187_v47 }
 0x1a3   :  { %v190_v52 = vrot.slane %v189_v51, 1  ;;  %v184_v53 = vadd.f32 %v183_v50, %v182_v48 }
 0x1a5   :  { %v191_v54 = vadd.f32 %v190_v52, %v189_v51  ;;  %v197_v57 = vmul.f32 %v242_v55, %v184_v53 }
 0x1a7   :  { %v198_v56 = vmul.f32 %v242_v55, %v191_v54 }
 0x1a9   :  { %v201_v58 = vrot.slane %v198_v56, 7 }
 0x1ab   :  { %v203_v59 = vsel %vm202_vm10, %v201_v58, %v197_v57 }
 0x1ac   :  { %v205_v60 = vsel %vm177_vm9, %v203_v59, 0.0 }
 0x1ad   :  { %206 = vadd.xlane.f32.xlu1 %v205_v60 }
 0x23a   :  { %v207_v63 = vpop.xlane.xlu1 %206 }
 0x23b   :  { %v210_v0 = vadd.f32 %v209_v61, %v207_v63 }
 0x23d   :  { %v215_v1 = vrot.slane %v210_v0, %v214_v62 }
 0x23f   :  { %218 = vst.msk [vmem:[#allocation8] sm:$0x1] %vm217_vm11, %v215_v1 }
 0x240   :  { %351 = shalt.err (!%p348_p6)
}
 0x241   :  { %s352_s3 = scalar_lea.hbm %s466_s4, 16 }
 0x242   :  { %p353_p7 = scmp.ne.s32.totalorder %s466_s4, %s352_s3  ;;  %p356_p8 = scmp.lt.u32.totalorder %s352_s3, %s466_s4 }
 0x244   :  { %p358_p9 = pnand %p356_p8, %p353_p7 }
 0x246   :  { %361 = shalt.err (!%p358_p9)
}
 0x247   :  { %228 = dma.vmem_to_hbm [thread:$0]  %s226_s20, 16, %s466_s4, [#allocation5]  }
 0x248   :  { %366 = dma.done.wait [#allocation5], 16  }
 0x249   :  { %367 = vsyncadd [#allocation5], 4294967280 }
 0x24a   :  { %232 = vsyncpa [#allocation4], 1 }
 0x24b   :  { %233 = vsyncpa [#allocation7], 1 }
 0x24c   :  { %234 = vsyncpa [#allocation5], 1 }

</bundles_post_ra>
